<compile_context>
chip_gen: v6e
topology: v6e:2x2x1
jax: 0.10.0
libtpu: 0.0.40
codegen_flags: <defaults>
</compile_context>

<pallas_src>
import jax
import jax.numpy as jnp
import numpy as np
from jax.experimental import pallas as pl
from jax.experimental.pallas import tpu as pltpu


# ---------------------------------------------------------------------------
# Config (small synthetic shapes consistent with the module)
# ---------------------------------------------------------------------------
BATCH = 2
SEQ = 8
HIDDEN = 32
NUM_FILTERS = 4
FILTER_SIZES = (2, 3, 4)
NUM_CLASSES = 3
VOCAB = 30


# ---------------------------------------------------------------------------
# Pallas kernel: attention -> fused conv/relu/maxpool -> FC (single shot)
# ---------------------------------------------------------------------------
def _make_kernel(batch, seq, k_max, tot_f):

    def kernel(enc_ref, w_omega_ref, u_omega_ref, linop_ref, conv_w_ref,
               bias_ref, fc_w_ref, fc_b_ref, out_ref):
        # ---- attention pooling over the whole flattened batch (B*S, H) ----
        enc = enc_ref[...]                                       # (BS, H)
        u = jnp.tanh(jnp.dot(enc, w_omega_ref[...],
                             preferred_element_type=jnp.float32))
        att = jnp.dot(u, u_omega_ref[...],
                      preferred_element_type=jnp.float32)        # (BS, 1)
        # Global max shift: softmax is invariant to a per-batch constant.
        att = att - jnp.max(att, axis=0, keepdims=True)
        e = jnp.exp(att)
        # Per-batch denominator broadcast back via block-diagonal ones matmul
        # (linop_ref[0] is the segment-sum operator).
        denom = jnp.dot(linop_ref[0], e,
                        preferred_element_type=jnp.float32)      # (BS, 1)
        att_score = e / denom
        scored = enc * att_score                                 # (BS, H)

        # ---- fused conv bank: k_max full-length matmuls + shift-add -------
        acc = jnp.dot(scored, conv_w_ref[0],
                      preferred_element_type=jnp.float32)        # (BS, tot_f)
        for i in range(1, k_max):
            p = jnp.dot(scored, conv_w_ref[i],
                        preferred_element_type=jnp.float32)      # (BS, tot_f)
            # linop_ref[i] @ p  ==  p shifted up by i rows (zero past the end)
            acc = acc + jnp.dot(linop_ref[i], p,
                                preferred_element_type=jnp.float32)
        # bias_ref carries the conv bias on valid rows and -1e30 on invalid
        # rows (filter overhang / batch seam), so ReLU kills them in one op.
        acc = jnp.maximum(acc + bias_ref[...], 0.0)              # (BS, tot_f)

        # ---- per-batch max-pool over the (masked) conv outputs ------------
        row = jax.lax.broadcasted_iota(jnp.int32, (batch, tot_f), 0)
        feat = jnp.zeros((batch, tot_f), jnp.float32)
        for b in range(batch):
            fb = jnp.max(acc[b * seq:(b + 1) * seq, :],
                         axis=0, keepdims=True)                  # (1, tot_f)
            feat = jnp.where(row == b,
                             jnp.broadcast_to(fb, (batch, tot_f)), feat)

        # ---- dropout (eval => identity) + final linear, one dense store ---
        logits = jnp.dot(feat, fc_w_ref[...],
                         preferred_element_type=jnp.float32) + fc_b_ref[...]
        out_ref[...] = logits                                    # (B, C)

    return kernel


def cnn_attention_head(encoder_out, params):
    """encoder_out: (B, S, H) float32.  Returns logits (B, num_classes)."""
    B, S, H = encoder_out.shape
    F = NUM_FILTERS
    nk = len(FILTER_SIZES)
    tot_f = nk * F
    k_max = max(FILTER_SIZES)
    BS = B * S

    # Fused, zero-padded conv weight (k_max, H, nk*F).
    w_big = jnp.zeros((k_max, H, tot_f), jnp.float32)
    for idx, k in enumerate(FILTER_SIZES):
        w_big = w_big.at[:k, :, idx * F:(idx + 1) * F].set(params["conv_w"][idx])
    b_big = jnp.concatenate(params["conv_b"], axis=1)            # (1, tot_f)

    # Validity mask: row b*S+t is a valid output of filter-group idx iff
    # t <= S - k_idx (no overhang, no batch-seam contamination).  Folded into
    # an additive bias: valid rows get the conv bias, invalid rows get -1e30
    # so that ReLU zeroes them (max-pool over ReLU outputs is unaffected).
    mask = np.zeros((BS, tot_f), np.float32)
    for idx, k in enumerate(FILTER_SIZES):
        for b in range(B):
            mask[b * S: b * S + (S - k + 1), idx * F:(idx + 1) * F] = 1.0
    bias_full = jnp.where(jnp.asarray(mask) > 0.0,
                          jnp.broadcast_to(b_big, (BS, tot_f)),
                          jnp.float32(-1e30))                    # (BS, tot_f)

    # Constant linear-operator bank (single DMA):
    #   linops[0]          : block-diagonal ones  -> per-batch softmax denom
    #   linops[i], i>=1    : shift-by-i operator  -> (linops[i] @ p)[t] = p[t+i]
    linops = np.zeros((k_max, BS, BS), np.float32)
    for b in range(B):
        linops[0, b * S:(b + 1) * S, b * S:(b + 1) * S] = 1.0
    for i in range(1, k_max):
        for t in range(BS - i):
            linops[i, t, t + i] = 1.0

    enc_flat = encoder_out.reshape(BS, H)

    kernel = _make_kernel(B, S, k_max, tot_f)
    vmem = pl.BlockSpec(memory_space=pltpu.MemorySpace.VMEM)

    out = pl.pallas_call(
        kernel,
        out_shape=jax.ShapeDtypeStruct((B, NUM_CLASSES), jnp.float32),
        in_specs=[vmem] * 8,
        out_specs=vmem,
    )(enc_flat, params["w_omega"], params["u_omega"], jnp.asarray(linops),
      w_big, bias_full, params["fc_w"], params["fc_b"])
    return out


# ---------------------------------------------------------------------------
# Pure-JAX reference (mirrors the PyTorch forward) for a sanity check
# ---------------------------------------------------------------------------
def reference_head(encoder_out, params):
    u = jnp.tanh(encoder_out @ params["w_omega"])                # (B,S,H)
    att = u @ params["u_omega"]                                  # (B,S,1)
    att_score = jax.nn.softmax(att, axis=1)
    scored = encoder_out * att_score                             # (B,S,H)
    feats = []
    for idx, k in enumerate(FILTER_SIZES):
        wk = params["conv_w"][idx]                               # (k,H,F)
        bk = params["conv_b"][idx]                               # (1,F)
        L = SEQ - k + 1
        acc = jnp.zeros((encoder_out.shape[0], L, NUM_FILTERS), jnp.float32)
        for i in range(k):
            acc = acc + scored[:, i:i + L, :] @ wk[i]
        acc = jax.nn.relu(acc + bk[None])
        feats.append(jnp.max(acc, axis=1))                       # (B,F)
    feat = jnp.concatenate(feats, axis=1)
    return feat @ params["fc_w"] + params["fc_b"]


# ---------------------------------------------------------------------------
# Parameter / input construction (deterministic)
# ---------------------------------------------------------------------------
def build_params(key):
    keys = jax.random.split(key, 8)
    conv_w = []
    conv_b = []
    for idx, k in enumerate(FILTER_SIZES):
        # torch Conv2d weight layout (F, 1, k, H) -> stored here as (k, H, F)
        w = 0.1 * jax.random.normal(jax.random.fold_in(keys[0], idx),
                                    (k, HIDDEN, NUM_FILTERS), jnp.float32)
        b = 0.1 * jax.random.normal(jax.random.fold_in(keys[1], idx),
                                    (1, NUM_FILTERS), jnp.float32)
        conv_w.append(w)
        conv_b.append(b)
    tot_f = NUM_FILTERS * len(FILTER_SIZES)
    return {
        "w_omega": 0.1 * jax.random.normal(keys[2], (HIDDEN, HIDDEN), jnp.float32),
        "u_omega": 0.1 * jax.random.normal(keys[3], (HIDDEN, 1), jnp.float32),
        "conv_w": conv_w,
        "conv_b": conv_b,
        # torch Linear weight (C, tot_f) -> stored pre-transposed (tot_f, C)
        "fc_w": 0.1 * jax.random.normal(keys[4], (tot_f, NUM_CLASSES), jnp.float32),
        "fc_b": 0.1 * jax.random.normal(keys[5], (1, NUM_CLASSES), jnp.float32),
        "emb": 0.5 * jax.random.normal(keys[6], (VOCAB, HIDDEN), jnp.float32),
    }


if __name__ == "__main__":
    key = jax.random.PRNGKey(0)
    params = build_params(key)

    # Synthetic inputs: (context token ids, seq_len, attention mask) like x[0], x[2]
    ctx_key, _ = jax.random.split(jax.random.fold_in(key, 99))
    context = jax.random.randint(ctx_key, (BATCH, SEQ), 0, VOCAB)
    attn_mask = jnp.ones((BATCH, SEQ), jnp.float32).at[:, SEQ - 2:].set(0.0)

    # TODO(synk): BertModel.from_pretrained has no Pallas equivalent; stand-in
    # encoder = deterministic embedding lookup masked by the attention mask.
    encoder_out = params["emb"][context] * attn_mask[..., None]  # (B, S, H)

    logits = cnn_attention_head(encoder_out, params)
    logits = jax.block_until_ready(logits)

    ref = reference_head(encoder_out, params)
    assert logits.shape == (BATCH, NUM_CLASSES)
    assert jnp.allclose(logits, ref, atol=1e-4, rtol=1e-4), (logits, ref)

    print("KERNEL_OK")
</pallas_src>

<mosaic_0001>
module attributes {stable_mosaic.version = 11 : i64} {
  func.func @kernel(%arg0: memref<16x32xf32, #tpu.memory_space<vmem>>, %arg1: memref<32x32xf32, #tpu.memory_space<vmem>>, %arg2: memref<32x1xf32, #tpu.memory_space<vmem>>, %arg3: memref<4x16x16xf32, #tpu.memory_space<vmem>>, %arg4: memref<4x32x12xf32, #tpu.memory_space<vmem>>, %arg5: memref<16x12xf32, #tpu.memory_space<vmem>>, %arg6: memref<12x3xf32, #tpu.memory_space<vmem>>, %arg7: memref<1x3xf32, #tpu.memory_space<vmem>>, %arg8: memref<2x3xf32, #tpu.memory_space<vmem>>) attributes {dimension_semantics = [], scalar_prefetch = 0 : i64, scratch_operands = 0 : i64, tpu.core_type = #tpu.core_type<tc>} {
    %c0 = arith.constant 0 : index
    %c0_0 = arith.constant 0 : index
    %0 = vector.load %arg0[%c0, %c0_0] : memref<16x32xf32, #tpu.memory_space<vmem>>, vector<16x32xf32>
    %c0_1 = arith.constant 0 : index
    %c0_2 = arith.constant 0 : index
    %1 = vector.load %arg1[%c0_1, %c0_2] : memref<32x32xf32, #tpu.memory_space<vmem>>, vector<32x32xf32>
    %cst = arith.constant dense<0.000000e+00> : vector<16x32xf32>
    %2 = tpu.matmul %0, %1, %cst {dimension_numbers = #tpu.dot_dimension_numbers<[1], [0], [0], [1], [0, 0, 1, 1], [], []>} : vector<16x32xf32>, vector<32x32xf32>, vector<16x32xf32> -> vector<16x32xf32>
    %3 = math.tanh %2 : vector<16x32xf32>
    %c0_3 = arith.constant 0 : index
    %c0_4 = arith.constant 0 : index
    %4 = vector.load %arg2[%c0_3, %c0_4] : memref<32x1xf32, #tpu.memory_space<vmem>>, vector<32x1xf32>
    %cst_5 = arith.constant dense<0.000000e+00> : vector<16x1xf32>
    %5 = tpu.matmul %3, %4, %cst_5 {dimension_numbers = #tpu.dot_dimension_numbers<[1], [0], [0], [1], [0, 0, 1, 1], [], []>} : vector<16x32xf32>, vector<32x1xf32>, vector<16x1xf32> -> vector<16x1xf32>
    %cst_6 = arith.constant dense<0xFF800000> : vector<1xf32>
    %6 = vector.multi_reduction <maximumf>, %5, %cst_6 [0] : vector<16x1xf32> to vector<1xf32>
    %7 = vector.shape_cast %6 : vector<1xf32> to vector<1x1xf32>
    %8 = vector.broadcast %7 : vector<1x1xf32> to vector<16x1xf32>
    %9 = arith.subf %5, %8 : vector<16x1xf32>
    %10 = math.exp %9 : vector<16x1xf32>
    %c0_7 = arith.constant 0 : index
    %c0_8 = arith.constant 0 : index
    %c0_9 = arith.constant 0 : index
    %11 = vector.load %arg3[%c0_7, %c0_8, %c0_9] : memref<4x16x16xf32, #tpu.memory_space<vmem>>, vector<1x16x16xf32>
    %12 = vector.shape_cast %11 : vector<1x16x16xf32> to vector<16x16xf32>
    %cst_10 = arith.constant dense<0.000000e+00> : vector<16x1xf32>
    %13 = tpu.matmul %12, %10, %cst_10 {dimension_numbers = #tpu.dot_dimension_numbers<[1], [0], [0], [1], [0, 0, 1, 1], [], []>} : vector<16x16xf32>, vector<16x1xf32>, vector<16x1xf32> -> vector<16x1xf32>
    %14 = arith.divf %10, %13 : vector<16x1xf32>
    %15 = vector.broadcast %14 : vector<16x1xf32> to vector<16x32xf32>
    %16 = arith.mulf %0, %15 : vector<16x32xf32>
    %c0_11 = arith.constant 0 : index
    %c0_12 = arith.constant 0 : index
    %c0_13 = arith.constant 0 : index
    %17 = vector.load %arg4[%c0_11, %c0_12, %c0_13] : memref<4x32x12xf32, #tpu.memory_space<vmem>>, vector<1x32x12xf32>
    %18 = vector.shape_cast %17 : vector<1x32x12xf32> to vector<32x12xf32>
    %cst_14 = arith.constant dense<0.000000e+00> : vector<16x12xf32>
    %19 = tpu.matmul %16, %18, %cst_14 {dimension_numbers = #tpu.dot_dimension_numbers<[1], [0], [0], [1], [0, 0, 1, 1], [], []>} : vector<16x32xf32>, vector<32x12xf32>, vector<16x12xf32> -> vector<16x12xf32>
    %c1 = arith.constant 1 : index
    %c0_15 = arith.constant 0 : index
    %c0_16 = arith.constant 0 : index
    %20 = vector.load %arg4[%c1, %c0_15, %c0_16] : memref<4x32x12xf32, #tpu.memory_space<vmem>>, vector<1x32x12xf32>
    %21 = vector.shape_cast %20 : vector<1x32x12xf32> to vector<32x12xf32>
    %cst_17 = arith.constant dense<0.000000e+00> : vector<16x12xf32>
    %22 = tpu.matmul %16, %21, %cst_17 {dimension_numbers = #tpu.dot_dimension_numbers<[1], [0], [0], [1], [0, 0, 1, 1], [], []>} : vector<16x32xf32>, vector<32x12xf32>, vector<16x12xf32> -> vector<16x12xf32>
    %c1_18 = arith.constant 1 : index
    %c0_19 = arith.constant 0 : index
    %c0_20 = arith.constant 0 : index
    %23 = vector.load %arg3[%c1_18, %c0_19, %c0_20] : memref<4x16x16xf32, #tpu.memory_space<vmem>>, vector<1x16x16xf32>
    %24 = vector.shape_cast %23 : vector<1x16x16xf32> to vector<16x16xf32>
    %cst_21 = arith.constant dense<0.000000e+00> : vector<16x12xf32>
    %25 = tpu.matmul %24, %22, %cst_21 {dimension_numbers = #tpu.dot_dimension_numbers<[1], [0], [0], [1], [0, 0, 1, 1], [], []>} : vector<16x16xf32>, vector<16x12xf32>, vector<16x12xf32> -> vector<16x12xf32>
    %26 = arith.addf %19, %25 : vector<16x12xf32>
    %c2 = arith.constant 2 : index
    %c0_22 = arith.constant 0 : index
    %c0_23 = arith.constant 0 : index
    %27 = vector.load %arg4[%c2, %c0_22, %c0_23] : memref<4x32x12xf32, #tpu.memory_space<vmem>>, vector<1x32x12xf32>
    %28 = vector.shape_cast %27 : vector<1x32x12xf32> to vector<32x12xf32>
    %cst_24 = arith.constant dense<0.000000e+00> : vector<16x12xf32>
    %29 = tpu.matmul %16, %28, %cst_24 {dimension_numbers = #tpu.dot_dimension_numbers<[1], [0], [0], [1], [0, 0, 1, 1], [], []>} : vector<16x32xf32>, vector<32x12xf32>, vector<16x12xf32> -> vector<16x12xf32>
    %c2_25 = arith.constant 2 : index
    %c0_26 = arith.constant 0 : index
    %c0_27 = arith.constant 0 : index
    %30 = vector.load %arg3[%c2_25, %c0_26, %c0_27] : memref<4x16x16xf32, #tpu.memory_space<vmem>>, vector<1x16x16xf32>
    %31 = vector.shape_cast %30 : vector<1x16x16xf32> to vector<16x16xf32>
    %cst_28 = arith.constant dense<0.000000e+00> : vector<16x12xf32>
    %32 = tpu.matmul %31, %29, %cst_28 {dimension_numbers = #tpu.dot_dimension_numbers<[1], [0], [0], [1], [0, 0, 1, 1], [], []>} : vector<16x16xf32>, vector<16x12xf32>, vector<16x12xf32> -> vector<16x12xf32>
    %33 = arith.addf %26, %32 : vector<16x12xf32>
    %c3 = arith.constant 3 : index
    %c0_29 = arith.constant 0 : index
    %c0_30 = arith.constant 0 : index
    %34 = vector.load %arg4[%c3, %c0_29, %c0_30] : memref<4x32x12xf32, #tpu.memory_space<vmem>>, vector<1x32x12xf32>
    %35 = vector.shape_cast %34 : vector<1x32x12xf32> to vector<32x12xf32>
    %cst_31 = arith.constant dense<0.000000e+00> : vector<16x12xf32>
    %36 = tpu.matmul %16, %35, %cst_31 {dimension_numbers = #tpu.dot_dimension_numbers<[1], [0], [0], [1], [0, 0, 1, 1], [], []>} : vector<16x32xf32>, vector<32x12xf32>, vector<16x12xf32> -> vector<16x12xf32>
    %c3_32 = arith.constant 3 : index
    %c0_33 = arith.constant 0 : index
    %c0_34 = arith.constant 0 : index
    %37 = vector.load %arg3[%c3_32, %c0_33, %c0_34] : memref<4x16x16xf32, #tpu.memory_space<vmem>>, vector<1x16x16xf32>
    %38 = vector.shape_cast %37 : vector<1x16x16xf32> to vector<16x16xf32>
    %cst_35 = arith.constant dense<0.000000e+00> : vector<16x12xf32>
    %39 = tpu.matmul %38, %36, %cst_35 {dimension_numbers = #tpu.dot_dimension_numbers<[1], [0], [0], [1], [0, 0, 1, 1], [], []>} : vector<16x16xf32>, vector<16x12xf32>, vector<16x12xf32> -> vector<16x12xf32>
    %40 = arith.addf %33, %39 : vector<16x12xf32>
    %c0_36 = arith.constant 0 : index
    %c0_37 = arith.constant 0 : index
    %41 = vector.load %arg5[%c0_36, %c0_37] : memref<16x12xf32, #tpu.memory_space<vmem>>, vector<16x12xf32>
    %42 = arith.addf %40, %41 : vector<16x12xf32>
    %cst_38 = arith.constant 0.000000e+00 : f32
    %43 = vector.broadcast %cst_38 : f32 to vector<16x12xf32>
    %44 = arith.maximumf %42, %43 : vector<16x12xf32>
    %45 = tpu.iota {dimensions = array<i32: 0>} : vector<2x12xi32>
    %cst_39 = arith.constant 0.000000e+00 : f32
    %46 = vector.broadcast %cst_39 : f32 to vector<2x12xf32>
    %47 = vector.extract_strided_slice %44 {offsets = [0, 0], sizes = [8, 12], strides = [1, 1]} : vector<16x12xf32> to vector<8x12xf32>
    %cst_40 = arith.constant dense<0xFF800000> : vector<12xf32>
    %48 = vector.multi_reduction <maximumf>, %47, %cst_40 [0] : vector<8x12xf32> to vector<12xf32>
    %49 = vector.shape_cast %48 : vector<12xf32> to vector<1x12xf32>
    %c0_i32 = arith.constant 0 : i32
    %50 = vector.broadcast %c0_i32 : i32 to vector<2x12xi32>
    %51 = arith.cmpi eq, %45, %50 : vector<2x12xi32>
    %52 = vector.shape_cast %49 : vector<1x12xf32> to vector<1x12xf32>
    %53 = vector.broadcast %52 : vector<1x12xf32> to vector<2x12xf32>
    %54 = arith.select %51, %53, %46 : vector<2x12xi1>, vector<2x12xf32>
    %55 = vector.extract_strided_slice %44 {offsets = [8, 0], sizes = [8, 12], strides = [1, 1]} : vector<16x12xf32> to vector<8x12xf32>
    %cst_41 = arith.constant dense<0xFF800000> : vector<12xf32>
    %56 = vector.multi_reduction <maximumf>, %55, %cst_41 [0] : vector<8x12xf32> to vector<12xf32>
    %57 = vector.shape_cast %56 : vector<12xf32> to vector<1x12xf32>
    %c1_i32 = arith.constant 1 : i32
    %58 = vector.broadcast %c1_i32 : i32 to vector<2x12xi32>
    %59 = arith.cmpi eq, %45, %58 : vector<2x12xi32>
    %60 = vector.shape_cast %57 : vector<1x12xf32> to vector<1x12xf32>
    %61 = vector.broadcast %60 : vector<1x12xf32> to vector<2x12xf32>
    %62 = arith.select %59, %61, %54 : vector<2x12xi1>, vector<2x12xf32>
    %c0_42 = arith.constant 0 : index
    %c0_43 = arith.constant 0 : index
    %63 = vector.load %arg6[%c0_42, %c0_43] : memref<12x3xf32, #tpu.memory_space<vmem>>, vector<12x3xf32>
    %cst_44 = arith.constant dense<0.000000e+00> : vector<2x3xf32>
    %64 = tpu.matmul %62, %63, %cst_44 {dimension_numbers = #tpu.dot_dimension_numbers<[1], [0], [0], [1], [0, 0, 1, 1], [], []>} : vector<2x12xf32>, vector<12x3xf32>, vector<2x3xf32> -> vector<2x3xf32>
    %c0_45 = arith.constant 0 : index
    %c0_46 = arith.constant 0 : index
    %65 = vector.load %arg7[%c0_45, %c0_46] : memref<1x3xf32, #tpu.memory_space<vmem>>, vector<1x3xf32>
    %66 = vector.broadcast %65 : vector<1x3xf32> to vector<2x3xf32>
    %67 = arith.addf %64, %66 : vector<2x3xf32>
    %c0_47 = arith.constant 0 : index
    %c0_48 = arith.constant 0 : index
    %68 = vector.load %arg8[%c0_47, %c0_48] : memref<2x3xf32, #tpu.memory_space<vmem>>, vector<2x3xf32>
    tpu.vector_store %arg8[%c0_47, %c0_48], %67 {strides = array<i32>} : memref<2x3xf32, #tpu.memory_space<vmem>>, vector<2x3xf32>,
    return
  }
}

</mosaic_0001>

<bundles_post_ra>
// kernel: tpu_custom_call.1
= control target key start
LH: loop header
LB: loop body
LE: loop exit
PB: predicated region body
PF: predicated region fallthrough
CT: control target
= control target key end

     0   :  { %vm36_vm0 = vcmask 261120   ;;  %s1467_s0 = inlined_call_operand.vmem [shape: f32[16,32], index: 0, kind: input, shape index: {}]   ;;  %s1468_s1 = inlined_call_operand.vmem [shape: f32[32,32], index: 1, kind: input, shape index: {}]   ;;  %s1469_s2 = inlined_call_operand.vmem [shape: f32[32,1], index: 2, kind: input, shape index: {}]   ;;  %s1470_s3 = inlined_call_operand.vmem [shape: f32[4,16,16], index: 3, kind: input, shape index: {}]   ;;  %s1471_s4 = inlined_call_operand.vmem [shape: f32[4,32,12], index: 4, kind: input, shape index: {}]   ;;  %s1472_s5 = inlined_call_operand.vmem [shape: f32[16,12], index: 5, kind: input, shape index: {}]   ;;  %s1473_s6 = inlined_call_operand.vmem [shape: f32[12,3], index: 6, kind: input, shape index: {}]   ;;  %s1474_s7 = inlined_call_operand.vmem [shape: f32[1,3], index: 7, kind: input, shape index: {}]   ;;  %s1475_s8 = inlined_call_operand.hbm [shape: f32[2,3], index: 8, kind: output, shape index: {}]  }
   0x1   :  { %v35_v0 = vld [vmem:[%s1468_s1 + $0x18] sm:$0xff]  ;;  %v34_v1 = vld [vmem:[%s1468_s1 + $0x10] sm:$0xff]  ;;  %v1325_v2 = vld [vmem:[%s1467_s0] sm:$0xff] }
   0x2   :  { %1127 = vmatprep.subr.mxu0 %v35_v0  ;;  %v33_v3 = vld [vmem:[%s1468_s1 + $0x8] sm:$0xff]  ;;  %1135 = vmatprep.mubr.msk.f32.mxu0 %vm36_vm0, %v1325_v2 }
   0x3   :  { %1128 = vmatpush3.msra.mxu0 %v35_v0 }
   0x4   :  { %13 = vsyncpa [#allocation3], 0  ;;  %1129 = vmatprep.subr.mxu0 %v34_v1  ;;  %v32_v4 = vld [vmem:[%s1468_s1] sm:$0xff]  ;;  %v1338_v5 = vld [vmem:[%s1467_s0 + $0x8] sm:$0xff]  ;;  %vm223_vm1 = vcmask 130048   ;;  %vm205_vm2 = vcmask 7168  }
   0x5   :  { %1130 = vmatpush3.msra.mxu0 %v34_v1  ;;  %v123_v6 = vld [vmem:[%s1469_s2 + $0x18] sm:$0xff]  ;;  %v122_v7 = vld [vmem:[%s1469_s2 + $0x10] sm:$0xff]  ;;  %v121_v8 = vld [vmem:[%s1469_s2 + $0x8] sm:$0xff]  ;;  %v1267_v33 = vmov 0   ;;  %vm941_vm3 = vcmask 1043456   ;;  %vm1269_vm4 = vmmov 0  }
   0x6   :  { %1131 = vmatprep.subr.mxu0 %v33_v3  ;;  %1138 = vmatprep.subr.mxu1 %v123_v6  ;;  %v120_v9 = vld [vmem:[%s1469_s2] sm:$0xff]  ;;  %v222_v32 = vld [vmem:[%s1470_s3 + $0x8] sm:$0xff]  ;;  %v1040_v34 = vld [vmem:[%s1471_s4 + $0x38] sm:$0xff]  ;;  %vm910_vm5 = vcmask 97280   ;;  %s1270_s26 = smov [#allocation2]   ;;  %vm1015_vm8 = vcmask 17408  }
   0x7   :  { %1132 = vmatpush3.msra.mxu0 %v33_v3  ;;  %1139 = vmatpush3.msra.mxu1 %v123_v6  ;;  %v221_v14 = vld [vmem:[%s1470_s3] sm:$0xff]  ;;  %v1039_v35 = vld [vmem:[%s1471_s4 + $0x30] sm:$0xff]  ;;  %v1038_v38 = vld [vmem:[%s1471_s4 + $0x28] sm:$0xff]  ;;  %s1023_s27 = sshll.u32 %s1270_s26, 4  ;;  %s1024_s27 = int_to_ptr.vmem [resolvable:$true] %s1023_s27 }
   0x8   :  { %1133 = vmatprep.subr.mxu0 %v32_v4  ;;  %1140 = vmatprep.subr.mxu1 %v122_v7  ;;  %v1037_v41 = vld [vmem:[%s1471_s4 + $0x20] sm:$0xff]  ;;  %v1052_v43 = vld [vmem:[%s1471_s4 + $0x58] sm:$0xff]  ;;  %v1051_v49 = vld [vmem:[%s1471_s4 + $0x50] sm:$0xff]  ;;  %s1245_s28 = scalar_lea.vmem %s1024_s27, 32  ;;  %p1250_p1 = scmp.lt.s32.totalorder %s1024_s27, %s1024_s27 }
   0x9   :  { %1134 = vmatpush3.msra.mxu0 %v32_v4  ;;  %1141 = vmatpush3.msra.mxu1 %v122_v7  ;;  %v1050_v50 = vld [vmem:[%s1471_s4 + $0x48] sm:$0xff]  ;;  %v1049_v51 = vld [vmem:[%s1471_s4 + $0x40] sm:$0xff]  ;;  %v1062_v52 = vld [vmem:[%s1471_s4 + $0x78] sm:$0xff]  ;;  %p1246_p0 = scmp.ne.s32.totalorder %s1024_s27, %s1245_s28  ;;  %p1251_p2 = scmp.lt.s32.totalorder %s1245_s28, %s1245_s28 }
   0xa   :  { %1136 = vmatmul.mubr.msk.f32.vlgmr.msra.gmra.mxu0 %vm36_vm0, %v1338_v5  ;;  %1142 = vmatprep.subr.mxu1 %v121_v8  ;;  %v1061_v53 = vld [vmem:[%s1471_s4 + $0x70] sm:$0xff]  ;;  %v1060_v54 = vld [vmem:[%s1471_s4 + $0x68] sm:$0xff]  ;;  %v1059_v55 = vld [vmem:[%s1471_s4 + $0x60] sm:$0xff] }
   0xb   :  { %1143 = vmatpush3.msra.mxu1 %v121_v8  ;;  %1153 = vmatprep.mubr.msk.f32.mxu0 %vm223_vm1, %v221_v14  ;;  %v1043_v56 = vld [vmem:[%s1470_s3 + $0x10] sm:$0xff]  ;;  %v1044_v59 = vld [vmem:[%s1470_s3 + $0x18] sm:$0xff]  ;;  %v322_v62 = vld [vmem:[%s1471_s4 + $0x8] sm:$0xff]  ;;  %p1252_p3 = por %p1251_p2, %p1250_p1 }
   0xc   :  { %1144 = vmatprep.subr.mxu1 %v120_v9  ;;  %1232 = vset.pattern.permute.xlu0 %v1267_v33  ;;  %v324_v60 = vld [vmem:[%s1471_s4 + $0x18] sm:$0xff]  ;;  %v323_v61 = vld [vmem:[%s1471_s4 + $0x10] sm:$0xff]  ;;  %v321_v63 = vld [vmem:[%s1471_s4] sm:$0xff] }
   0xd   :  { %1145 = vmatpush3.msra.mxu1 %v120_v9  ;;  %v1055_v1 = vld [vmem:[%s1470_s3 + $0x20] sm:$0xff]  ;;  %v1056_v3 = vld [vmem:[%s1470_s3 + $0x28] sm:$0xff]  ;;  %v1065_v4 = vld [vmem:[%s1470_s3 + $0x30] sm:$0xff]  ;;  %v1268_v9 = vmov 0.0   ;;  %p1253_p4 = pnand %p1252_p3, %p1246_p0 }
   0xe   :  { %1156 = vmatprep.subr.mxu1 %v1040_v34  ;;  %v1066_v7 = vld [vmem:[%s1470_s3 + $0x38] sm:$0xff]  ;;  %v930_v8 = vld [vmem:[%s1473_s6 + $0x8] sm:$0xf] }
  0xca   :  { %v1137_v10 = vpop.f32.mrf.mxu0 }
  0xcc   :  { %v109_v11 = vpop.f32.mrf.mxu0 }
  0xcd   :  { %1233 = vtanh.f32 %v109_v11 }
  0xce   :  { %1235 = vtanh.f32 %v1137_v10  ;;  %v929_v10 = vld [vmem:[%s1473_s6] sm:$0xff] }
  0xda   :  { %v1234_v12 = vpop.eup %1233 }
  0xdb   :  { %v1236_v13 = vpop.eup %1235  ;;  %1146 = vmatprep.mubr.msk.f32.mxu1 %vm36_vm0, %v1234_v12 }
  0xdc   :  { %1147 = vmatmul.mubr.msk.f32.vlgmr.msra.gmra.mxu1 %vm36_vm0, %v1236_v13 }
  0xdd   :  { %1157 = vmatpush3.msra.mxu1 %v1040_v34 }
  0xde   :  { %1158 = vmatprep.subr.mxu1 %v1039_v35 }
  0xdf   :  { %1159 = vmatpush3.msra.mxu1 %v1039_v35 }
  0xe0   :  { %1160 = vmatprep.subr.mxu1 %v1038_v38 }
  0xe1   :  { %1161 = vmatpush3.msra.mxu1 %v1038_v38 }
  0xe2   :  { %1162 = vmatprep.subr.mxu1 %v1037_v41 }
  0xe3   :  { %1163 = vmatpush3.msra.mxu1 %v1037_v41 }
  0xe4   :  { %1185 = vmatprep.subr.mxu1 %v1052_v43 }
 0x19c   :  { %v1148_v15 = vpop.f32.mrf.mxu1 }
 0x19d   :  { %v207_v17 = vsel %vm205_vm2, %v1148_v15, -inf }
 0x19e   :  { %v196_v16 = vpop.f32.mrf.mxu1 }
 0x19f   :  { %v206_v18 = vsel %vm205_vm2, %v196_v16, -inf }
 0x1a0   :  { %v208_v19 = vmax.f32 %v206_v18, %v207_v17 }
 0x1a2   :  { %v209_v20 = vrot.slane %v208_v19, 4 }
 0x1a4   :  { %v210_v21 = vmax.f32 %v208_v19, %v209_v20 }
 0x1a6   :  { %v211_v22 = vrot.slane %v210_v21, 2 }
 0x1a8   :  { %v212_v23 = vmax.f32 %v210_v21, %v211_v22  ;;  %v903_v21 = vld [vmem:[%s1472_s5 + $0x8] sm:$0xff] }
 0x1aa   :  { %v213_v24 = vrot.slane %v212_v23, 1 }
 0x1ac   :  { %v214_v25 = vmax.f32 %v212_v23, %v213_v24 }
 0x1ae   :  { %v215_v26 = vsub.f32 %v196_v16, %v214_v25  ;;  %v216_v27 = vsub.f32 %v1148_v15, %v214_v25  ;;  %v902_v25 = vld [vmem:[%s1472_s5] sm:$0xff] }
 0x1b0   :  { %v219_v28 = vmul.f32 1.442695, %v216_v27  ;;  %v217_v29 = vmul.f32 1.442695, %v215_v26 }
 0x1b2   :  { %1237 = vpow2.f32 %v219_v28 }
 0x1b3   :  { %1239 = vpow2.f32 %v217_v29 }
 0x1bf   :  { %v1238_v30 = vpop.eup %1237 }
 0x1c0   :  { %1149 = vmatprep.subr.mxu0 %v1238_v30  ;;  %v1240_v31 = vpop.eup %1239 }
 0x1c1   :  { %1150 = vmatpush3.msra.mxu0 %v1238_v30 }
 0x1c2   :  { %1151 = vmatprep.subr.mxu0 %v1240_v31 }
 0x1c3   :  { %1152 = vmatpush3.msra.mxu0 %v1240_v31 }
 0x1c4   :  { %1154 = vmatmul.mubr.msk.f32.vlgmr.msra.gmra.mxu0 %vm223_vm1, %v222_v32 }
 0x1c5   :  { %1171 = vmatprep.mubr.msk.f32.mxu0 %vm223_vm1, %v1043_v56 }
 0x284   :  { %v1155_v36 = vpop.f32.mrf.mxu0 }
 0x286   :  { %v296_v37 = vpop.f32.mrf.mxu0 }
 0x287   :  { %1241 = vrcp.f32 %v296_v37 }
 0x288   :  { %1243 = vrcp.f32 %v1155_v36  ;;  %v908_v36 = vlaneseq }
 0x28a   :  { %v909_v41 = vshrl.u32 %v908_v36, 7 }
 0x28c   :  { %vm918_vm6 = vcmp.eq.s32.totalorder %v909_v41, 0  ;;  %vm927_vm7 = vcmp.eq.s32.totalorder %v909_v41, 1 }
 0x294   :  { %v1242_v39 = vpop.eup %1241 }
 0x295   :  { %v306_v40 = vmul.f32 %v1242_v39, %v1240_v31  ;;  %v1244_v42 = vpop.eup %1243 }
 0x296   :  { %v308_v44 = vmul.f32 %v1244_v42, %v1238_v30 }
 0x297   :  { %311 = vperm.xlu0 %1232, %v306_v40  }
 0x29b   :  { %316 = vperm.xlu0 %1232, %v308_v44  }
 0x312   :  { %v312_v45 = vpop.permute.xlu0 %311 }
 0x313   :  { %v319_v46 = vmul.f32 %v312_v45, %v1325_v2 }
 0x315   :  { %1164 = vmatprep.mubr.msk.f32.mxu1 %vm36_vm0, %v319_v46 }
 0x316   :  { %v317_v47 = vpop.permute.xlu0 %316 }
 0x317   :  { %v320_v48 = vmul.f32 %v317_v47, %v1338_v5 }
 0x319   :  { %1165 = vmatmul.mubr.msk.f32.vlgmr.msra.gmra.mxu1 %vm36_vm0, %v320_v48 }
 0x31a   :  { %1186 = vmatpush3.msra.mxu1 %v1052_v43  ;;  %1193 = vmatprep.mubr.msk.f32.mxu1 %vm36_vm0, %v319_v46 }
 0x31b   :  { %1187 = vmatprep.subr.mxu1 %v1051_v49 }
 0x31c   :  { %1188 = vmatpush3.msra.mxu1 %v1051_v49  ;;  %v1069_v49 = vld [vmem:[%s1474_s7] ss:$0 sm:$0xff] }
 0x31d   :  { %1189 = vmatprep.subr.mxu1 %v1050_v50 }
 0x31e   :  { %1190 = vmatpush3.msra.mxu1 %v1050_v50 }
 0x31f   :  { %1191 = vmatprep.subr.mxu1 %v1049_v51 }
 0x320   :  { %1192 = vmatpush3.msra.mxu1 %v1049_v51 }
 0x321   :  { %1194 = vmatmul.mubr.msk.f32.vlgmr.msra.gmra.mxu1 %vm36_vm0, %v320_v48  ;;  %1203 = vmatprep.subr.mxu1 %v1062_v52 }
 0x322   :  { %1204 = vmatpush3.msra.mxu1 %v1062_v52  ;;  %1211 = vmatprep.mubr.msk.f32.mxu1 %vm36_vm0, %v319_v46 }
 0x323   :  { %1205 = vmatprep.subr.mxu1 %v1061_v53 }
 0x324   :  { %1206 = vmatpush3.msra.mxu1 %v1061_v53 }
 0x325   :  { %1207 = vmatprep.subr.mxu1 %v1060_v54 }
 0x326   :  { %1208 = vmatpush3.msra.mxu1 %v1060_v54 }
 0x327   :  { %1209 = vmatprep.subr.mxu1 %v1059_v55 }
 0x328   :  { %1210 = vmatpush3.msra.mxu1 %v1059_v55 }
 0x329   :  { %1212 = vmatmul.mubr.msk.f32.vlgmr.msra.gmra.mxu1 %vm36_vm0, %v320_v48 }
 0x3d9   :  { %v1166_v57 = vpop.f32.mrf.mxu1 }
 0x3da   :  { %1167 = vmatprep.subr.mxu0 %v1166_v57 }
 0x3db   :  { %v402_v58 = vpop.f32.mrf.mxu1  ;;  %1168 = vmatpush3.msra.mxu0 %v1166_v57 }
 0x3dc   :  { %1169 = vmatprep.subr.mxu0 %v402_v58 }
 0x3dd   :  { %1170 = vmatpush3.msra.mxu0 %v402_v58 }
 0x3de   :  { %1172 = vmatmul.mubr.msk.f32.vlgmr.msra.gmra.mxu0 %vm223_vm1, %v1044_v59  ;;  %1174 = vmatprep.subr.mxu0 %v324_v60 }
 0x3df   :  { %1175 = vmatpush3.msra.mxu0 %v324_v60  ;;  %1182 = vmatprep.mubr.msk.f32.mxu0 %vm36_vm0, %v319_v46 }
 0x3e0   :  { %1176 = vmatprep.subr.mxu0 %v323_v61 }
 0x3e1   :  { %1177 = vmatpush3.msra.mxu0 %v323_v61  ;;  %v1195_v0 = vpop.f32.mrf.mxu1 }
 0x3e2   :  { %1178 = vmatprep.subr.mxu0 %v322_v62 }
 0x3e3   :  { %1179 = vmatpush3.msra.mxu0 %v322_v62  ;;  %v641_v2 = vpop.f32.mrf.mxu1 }
 0x3e4   :  { %1180 = vmatprep.subr.mxu0 %v321_v63 }
 0x3e5   :  { %1181 = vmatpush3.msra.mxu0 %v321_v63 }
 0x3e6   :  { %1183 = vmatmul.mubr.msk.f32.vlgmr.msra.gmra.mxu0 %vm36_vm0, %v320_v48  ;;  %1196 = vmatprep.subr.mxu0 %v1195_v0 }
 0x3e7   :  { %1197 = vmatpush3.msra.mxu0 %v1195_v0  ;;  %1200 = vmatprep.mubr.msk.f32.mxu0 %vm223_vm1, %v1055_v1 }
 0x3e8   :  { %1198 = vmatprep.subr.mxu0 %v641_v2 }
 0x3e9   :  { %v1213_v5 = vpop.f32.mrf.mxu1  ;;  %1199 = vmatpush3.msra.mxu0 %v641_v2 }
 0x3ea   :  { %1201 = vmatmul.mubr.msk.f32.vlgmr.msra.gmra.mxu0 %vm223_vm1, %v1056_v3  ;;  %1214 = vmatprep.subr.mxu0 %v1213_v5 }
 0x3eb   :  { %v807_v6 = vpop.f32.mrf.mxu1  ;;  %1215 = vmatpush3.msra.mxu0 %v1213_v5  ;;  %1218 = vmatprep.mubr.msk.f32.mxu0 %vm223_vm1, %v1065_v4 }
 0x3ec   :  { %1216 = vmatprep.subr.mxu0 %v807_v6 }
 0x3ed   :  { %1217 = vmatpush3.msra.mxu0 %v807_v6 }
 0x3ee   :  { %1219 = vmatmul.mubr.msk.f32.vlgmr.msra.gmra.mxu0 %vm223_vm1, %v1066_v7  ;;  %1221 = vmatprep.subr.mxu0 %v1268_v9 }
 0x3ef   :  { %1225 = vmatprep.mubr.msk.f32.mxu0 %vm1269_vm4, %v1268_v9  ;;  %1222 = vmatpush3.msk.msra.mxu0 %vm941_vm3, %v930_v8 }
 0x3f0   :  { %1223 = vmatprep.subr.mxu0 %v1268_v9 }
 0x3f1   :  { %1224 = vmatpush3.msra.mxu0 %v929_v10 }
 0x49e   :  { %v1173_v11 = vpop.f32.mrf.mxu0 }
 0x4a0   :  { %v486_v12 = vpop.f32.mrf.mxu0 }
 0x4a6   :  { %v1184_v13 = vpop.f32.mrf.mxu0 }
 0x4a7   :  { %v567_v16 = vadd.f32 %v1184_v13, %v1173_v11 }
 0x4a8   :  { %v561_v14 = vpop.f32.mrf.mxu0 }
 0x4a9   :  { %v562_v18 = vadd.f32 %v561_v14, %v486_v12 }
 0x4aa   :  { %v1202_v15 = vpop.f32.mrf.mxu0 }
 0x4ab   :  { %v735_v19 = vadd.f32 %v1202_v15, %v567_v16 }
 0x4ac   :  { %v725_v17 = vpop.f32.mrf.mxu0 }
 0x4ad   :  { %v734_v22 = vadd.f32 %v725_v17, %v562_v18 }
 0x4ae   :  { %v1220_v20 = vpop.f32.mrf.mxu0 }
 0x4af   :  { %v901_v23 = vadd.f32 %v1220_v20, %v735_v19 }
 0x4b0   :  { %v891_v24 = vpop.f32.mrf.mxu0 }
 0x4b1   :  { %v905_v26 = vadd.f32 %v903_v21, %v901_v23  ;;  %v900_v27 = vadd.f32 %v891_v24, %v734_v22 }
 0x4b3   :  { %v907_v28 = vmax.f32 %v905_v26, 0.0  ;;  %v904_v29 = vadd.f32 %v902_v25, %v900_v27 }
 0x4b5   :  { %v920_v30 = vsel %vm910_vm5, %v907_v28, -inf  ;;  %v906_v31 = vmax.f32 %v904_v29, 0.0 }
 0x4b6   :  { %v921_v32 = vrot.slane %v920_v30, 4 }
 0x4b7   :  { %v911_v33 = vsel %vm910_vm5, %v906_v31, -inf }
 0x4b8   :  { %v922_v34 = vmax.f32 %v920_v30, %v921_v32  ;;  %v912_v35 = vrot.slane %v911_v33, 4 }
 0x4ba   :  { %v923_v37 = vrot.slane %v922_v34, 2  ;;  %v913_v38 = vmax.f32 %v911_v33, %v912_v35 }
 0x4bc   :  { %v924_v39 = vmax.f32 %v922_v34, %v923_v37  ;;  %v914_v40 = vrot.slane %v913_v38, 2 }
 0x4be   :  { %v915_v42 = vmax.f32 %v913_v38, %v914_v40  ;;  %v925_v43 = vrot.slane %v924_v39, 1 }
 0x4c0   :  { %v916_v44 = vrot.slane %v915_v42, 1  ;;  %v926_v46 = vmax.f32 %v924_v39, %v925_v43 }
 0x4c2   :  { %v917_v45 = vmax.f32 %v915_v42, %v916_v44 }
 0x4c4   :  { %v919_v47 = vsel %vm918_vm6, %v917_v45, 0.0 }
 0x4c5   :  { %v928_v48 = vsel %vm927_vm7, %v926_v46, %v919_v47 }
 0x4c6   :  { %1226 = vmatmul.mubr.msk.f32.vlgmr.msra.gmra.mxu0 %vm910_vm5, %v928_v48 }
 0x586   :  { %v1011_v50 = vpop.f32.mrf.mxu0 }
 0x587   :  { %v1012_v51 = vadd.f32 %v1069_v49, %v1011_v50 }
 0x588   :  { %v1227_v52 = vpop.f32.mrf.mxu0 }
 0x589   :  { %1016 = vst.msk [vmem:[#allocation2] sm:$0x3] %vm1015_vm8, %v1012_v51 }
 0x58a   :  { %1256 = shalt.err (!%p1253_p4)
}
 0x58b   :  { %1026 = dma.vmem_to_hbm [thread:$0]  %s1024_s27, 32, %s1475_s8, [#allocation3]  }
 0x58c   :  { %1265 = dma.done.wait [#allocation3], 32  }
 0x58d   :  { %1266 = vsyncadd [#allocation3], 4294967264 }
 0x58e   :  { %1030 = vsyncpa [#allocation3], 1 }

</bundles_post_ra>
